<compile_context>
chip_gen: v5e
topology: v5e:2x2
jax: 0.10.0
libtpu: 0.0.40
codegen_flags: <defaults>
</compile_context>

<pallas_src>
import functools

import jax
import jax.numpy as jnp
from jax import lax
from jax.experimental import pallas as pl
from jax.experimental.pallas import tpu as pltpu


def _round_up(x, m):
    return (x + m - 1) // m * m


def _cf_gather_kernel(uid_ref, iid_ref,      # SMEM (B_pad,) int32  (scalar prefetch)
                      uf_hbm, if_hbm,        # HBM  (n_rows, F_pad) f32 (memory_space=ANY)
                      o_ref,                 # VMEM (1, TB) f32 output block
                      ubuf, ibuf, sem):      # scratch: VMEM (2,TB,F_pad) x2, DMA sem (2,2)
    t = pl.program_id(0)
    nt = pl.num_programs(0)
    tb = ubuf.shape[1]

    def issue_tile(tile_idx, slot):
        base = tile_idx * tb

        def body(j, carry):
            u = uid_ref[base + j]
            i = iid_ref[base + j]
            pltpu.make_async_copy(uf_hbm.at[u], ubuf.at[slot, j], sem.at[0, slot]).start()
            pltpu.make_async_copy(if_hbm.at[i], ibuf.at[slot, j], sem.at[1, slot]).start()
            return carry

        lax.fori_loop(0, tb, body, 0)

    # Prime the pipeline: first grid step issues its own gathers into slot 0.
    @pl.when(t == 0)
    def _():
        issue_tile(0, 0)

    slot = lax.rem(t, 2)

    # Prefetch the next tile's rows into the other slot -- overlaps with this
    # tile's drain + compute + output writeback.
    @pl.when(t + 1 < nt)
    def _():
        issue_tile(t + 1, lax.rem(t + 1, 2))

    # Drain this tile's row copies (one wait per issued copy; identical sizes).
    def drain(j, carry):
        pltpu.make_async_copy(uf_hbm.at[0], ubuf.at[slot, j], sem.at[0, slot]).wait()
        pltpu.make_async_copy(if_hbm.at[0], ibuf.at[slot, j], sem.at[1, slot]).wait()
        return carry

    lax.fori_loop(0, tb, drain, 0)

    # (TB, F_pad): biases are already folded into the augmented factor columns,
    # padding columns are zero, so a plain product + lane-reduce is the answer.
    prod = ubuf[slot] * ibuf[slot]
    s = jnp.sum(prod, axis=1)                        # (TB,)
    o_ref[...] = jax.nn.sigmoid(s).reshape(1, tb)    # lane-dense (1, TB) store


@functools.partial(jax.jit, static_argnames=("block_rows",))
def _baseline_cf_forward_impl(uid, iid, uf, itf, *, block_rows):
    b_pad = uid.shape[0]
    tb = block_rows
    num_tiles = b_pad // tb
    f_pad = uf.shape[1]

    out = pl.pallas_call(
        _cf_gather_kernel,
        out_shape=jax.ShapeDtypeStruct((1, b_pad), jnp.float32),
        grid_spec=pltpu.PrefetchScalarGridSpec(
            num_scalar_prefetch=2,
            grid=(num_tiles,),
            in_specs=[pl.BlockSpec(memory_space=pl.ANY),   # user table stays in HBM
                      pl.BlockSpec(memory_space=pl.ANY)],  # item table stays in HBM
            out_specs=pl.BlockSpec((1, tb), lambda t, uid_r, iid_r: (0, t)),
            scratch_shapes=[
                pltpu.VMEM((2, tb, f_pad), jnp.float32),   # double-buffered user rows
                pltpu.VMEM((2, tb, f_pad), jnp.float32),   # double-buffered item rows
                pltpu.SemaphoreType.DMA((2, 2)),           # [table, slot]
            ],
        ),
        compiler_params=pltpu.CompilerParams(
            # Batch axis carries scratch state (cross-step prefetch) -> arbitrary.
            dimension_semantics=("arbitrary",),
            vmem_limit_bytes=32 * 1024 * 1024,
        ),
    )(uid, iid, uf, itf)
    return out


def baseline_cf_forward(data, user_factors, item_factors,
                        user_bias=None, item_bias=None, *, block_rows=256):
    """data: (B, 2) int; returns (B, 1) f32 = sigmoid((u*i).sum(-1) [+ biases])."""
    B = data.shape[0]
    n_users, n_factors = user_factors.shape
    n_items = item_factors.shape[0]
    use_bias = (user_bias is not None) and (item_bias is not None)

    dtype = jnp.float32
    uf = user_factors.astype(dtype)
    itf = item_factors.astype(dtype)
    if use_bias:
        # Fold biases into the dot: [U | ub | 1] . [I | 1 | ib] = U.I + ub + ib
        uf = jnp.concatenate(
            [uf, user_bias.reshape(n_users, 1).astype(dtype), jnp.ones((n_users, 1), dtype)],
            axis=1)
        itf = jnp.concatenate(
            [itf, jnp.ones((n_items, 1), dtype), item_bias.reshape(n_items, 1).astype(dtype)],
            axis=1)

    # Pad the factor axis to a lane-aligned width (zeros do not change the dot).
    # TODO(synk): for very large tables, keep them pre-padded in HBM (or DMA
    # unpadded rows into a zero-initialized scratch) instead of padding here.
    f_aug = uf.shape[1]
    f_pad = _round_up(f_aug, 128)
    if f_pad != f_aug:
        uf = jnp.pad(uf, ((0, 0), (0, f_pad - f_aug)))
        itf = jnp.pad(itf, ((0, 0), (0, f_pad - f_aug)))

    # Batch tiling: multiple of 128 for lane-dense output stores.
    # (Tune block_rows per generation: ~128 on v5e, 256-512 on v6e/v7x.)
    tb = _round_up(min(max(block_rows, 128), max(B, 128)), 128)
    b_pad = _round_up(B, tb)

    # Padding rows use id 0 (valid row) so the gather DMAs never go out of bounds.
    uid = jnp.zeros((b_pad,), jnp.int32).at[:B].set(data[:, 0].astype(jnp.int32))
    iid = jnp.zeros((b_pad,), jnp.int32).at[:B].set(data[:, 1].astype(jnp.int32))

    out = _baseline_cf_forward_impl(uid, iid, uf, itf, block_rows=tb)
    return out[0, :B].reshape(B, 1)


def _reference_forward(data, user_factors, item_factors, user_bias, item_bias):
    users = user_factors[data[:, 0]]
    items = item_factors[data[:, 1]]
    out = jnp.sum(users * items, axis=1, keepdims=True)
    if user_bias is not None and item_bias is not None:
        out = out + user_bias[data[:, 0]] + item_bias[data[:, 1]]
    return jax.nn.sigmoid(out)


if __name__ == "__main__":
    n_users, n_items, n_factors, batch = 16, 32, 32, 8

    key = jax.random.PRNGKey(0)
    k_uf, k_if, k_ub, k_ib, k_u, k_i = jax.random.split(key, 6)

    # Deterministic parameter init (mimics nn.Embedding's N(0, 1) init).
    user_factors = jax.random.normal(k_uf, (n_users, n_factors), jnp.float32)
    item_factors = jax.random.normal(k_if, (n_items, n_factors), jnp.float32)
    user_bias = jax.random.normal(k_ub, (n_users, 1), jnp.float32)
    item_bias = jax.random.normal(k_ib, (n_items, 1), jnp.float32)

    # Input: (B, 2) int32 of [user_id, item_id]
    uids = jax.random.randint(k_u, (batch, 1), 0, n_users, jnp.int32)
    iids = jax.random.randint(k_i, (batch, 1), 0, n_items, jnp.int32)
    data = jnp.concatenate([uids, iids], axis=1)

    # bias=True path
    out = baseline_cf_forward(data, user_factors, item_factors, user_bias, item_bias)
    out = jax.block_until_ready(out)
    ref = _reference_forward(data, user_factors, item_factors, user_bias, item_bias)
    assert out.shape == (batch, 1), out.shape
    assert jnp.allclose(out, ref, atol=1e-5, rtol=1e-5), (out, ref)

    # bias=False path (same compiled kernel; only the wrapper-side tables differ)
    out_nb = baseline_cf_forward(data, user_factors, item_factors)
    out_nb = jax.block_until_ready(out_nb)
    ref_nb = _reference_forward(data, user_factors, item_factors, None, None)
    assert jnp.allclose(out_nb, ref_nb, atol=1e-5, rtol=1e-5), (out_nb, ref_nb)

    print("KERNEL_OK")
</pallas_src>

<mosaic_0001>
module attributes {stable_mosaic.version = 11 : i64} {
  func.func @_cf_gather_kernel(%arg0: i32, %arg1: memref<128xi32, #tpu.memory_space<smem>>, %arg2: memref<128xi32, #tpu.memory_space<smem>>, %arg3: memref<16x128xf32, #tpu.memory_space<any>>, %arg4: memref<32x128xf32, #tpu.memory_space<any>>, %arg5: memref<1x128xf32, #tpu.memory_space<vmem>>, %arg6: memref<2x128x128xf32, #tpu.memory_space<vmem>>, %arg7: memref<2x128x128xf32, #tpu.memory_space<vmem>>, %arg8: memref<2x2x!tpu.dma_semaphore, #tpu.memory_space<semaphore_mem>>) attributes {dimension_semantics = [#tpu.dimension_semantics<arbitrary>], iteration_bounds = array<i64: 1>, scalar_prefetch = 2 : i64, scratch_operands = 3 : i64, tpu.core_type = #tpu.core_type<tc>, window_params = [{}, {}, {transform_indices = @transform_2, window_bounds = array<i64: 1, 128>}]} {
    %c0_i32 = arith.constant 0 : i32
    %0 = arith.cmpi eq, %arg0, %c0_i32 : i32
    %1 = arith.extui %0 : i1 to i32
    %c0_i32_0 = arith.constant 0 : i32
    %2 = arith.cmpi ne, %1, %c0_i32_0 : i32
    scf.if %2 {
      %c0_i32_12 = arith.constant 0 : i32
      %c128_i32_13 = arith.constant 128 : i32
      %24 = arith.addi %c0_i32_12, %c128_i32_13 : i32
      %c1_i32_14 = arith.constant 1 : i32
      scf.for %arg9 = %c0_i32_12 to %24 step %c1_i32_14  : i32 {
        %c0_i32_16 = arith.constant 0 : i32
        %25 = arith.addi %c0_i32_16, %arg9 : i32
        %26 = arith.index_cast %25 : i32 to index
        %27 = memref.load %arg1[%26] : memref<128xi32, #tpu.memory_space<smem>>
        %c0_i32_17 = arith.constant 0 : i32
        %28 = arith.addi %c0_i32_17, %arg9 : i32
        %29 = arith.index_cast %28 : i32 to index
        %30 = memref.load %arg2[%29] : memref<128xi32, #tpu.memory_space<smem>>
        %c0_i32_18 = arith.constant 0 : i32
        %c0_i32_19 = arith.constant 0 : i32
        %c0_i32_20 = arith.constant 0 : i32
        %c0_i32_21 = arith.constant 0 : i32
        %31 = tpu.memref_slice %arg3[%27, %c0_i32_21] : memref<16x128xf32, #tpu.memory_space<any>> -> memref<1x128xf32, #tpu.memory_space<any>>
        %32 = tpu.memref_squeeze %31 : memref<1x128xf32, #tpu.memory_space<any>> -> memref<128xf32, #tpu.memory_space<any>>
        %c0_i32_22 = arith.constant 0 : i32
        %33 = tpu.memref_slice %arg6[%c0_i32_18, %arg9, %c0_i32_22] : memref<2x128x128xf32, #tpu.memory_space<vmem>> -> memref<1x1x128xf32, #tpu.memory_space<vmem>>
        %34 = tpu.memref_squeeze %33 : memref<1x1x128xf32, #tpu.memory_space<vmem>> -> memref<128xf32, #tpu.memory_space<vmem>>
        %35 = tpu.memref_slice %arg8[%c0_i32_19, %c0_i32_20] : memref<2x2x!tpu.dma_semaphore, #tpu.memory_space<semaphore_mem>> -> memref<1x1x!tpu.dma_semaphore, #tpu.memory_space<semaphore_mem>>
        %36 = tpu.memref_squeeze %35 : memref<1x1x!tpu.dma_semaphore, #tpu.memory_space<semaphore_mem>> -> memref<!tpu.dma_semaphore, #tpu.memory_space<semaphore_mem>>
        tpu.enqueue_dma source(%32 : memref<128xf32, #tpu.memory_space<any>>) target(%34 : memref<128xf32, #tpu.memory_space<vmem>>) target_semaphore(%36 : memref<!tpu.dma_semaphore, #tpu.memory_space<semaphore_mem>>)
        %c0_i32_23 = arith.constant 0 : i32
        %c1_i32_24 = arith.constant 1 : i32
        %c0_i32_25 = arith.constant 0 : i32
        %c0_i32_26 = arith.constant 0 : i32
        %37 = tpu.memref_slice %arg4[%30, %c0_i32_26] : memref<32x128xf32, #tpu.memory_space<any>> -> memref<1x128xf32, #tpu.memory_space<any>>
        %38 = tpu.memref_squeeze %37 : memref<1x128xf32, #tpu.memory_space<any>> -> memref<128xf32, #tpu.memory_space<any>>
        %c0_i32_27 = arith.constant 0 : i32
        %39 = tpu.memref_slice %arg7[%c0_i32_23, %arg9, %c0_i32_27] : memref<2x128x128xf32, #tpu.memory_space<vmem>> -> memref<1x1x128xf32, #tpu.memory_space<vmem>>
        %40 = tpu.memref_squeeze %39 : memref<1x1x128xf32, #tpu.memory_space<vmem>> -> memref<128xf32, #tpu.memory_space<vmem>>
        %41 = tpu.memref_slice %arg8[%c1_i32_24, %c0_i32_25] : memref<2x2x!tpu.dma_semaphore, #tpu.memory_space<semaphore_mem>> -> memref<1x1x!tpu.dma_semaphore, #tpu.memory_space<semaphore_mem>>
        %42 = tpu.memref_squeeze %41 : memref<1x1x!tpu.dma_semaphore, #tpu.memory_space<semaphore_mem>> -> memref<!tpu.dma_semaphore, #tpu.memory_space<semaphore_mem>>
        tpu.enqueue_dma source(%38 : memref<128xf32, #tpu.memory_space<any>>) target(%40 : memref<128xf32, #tpu.memory_space<vmem>>) target_semaphore(%42 : memref<!tpu.dma_semaphore, #tpu.memory_space<semaphore_mem>>)
      }
      %c128_i32_15 = arith.constant 128 : i32
    } else {
    }
    %c2_i32 = arith.constant 2 : i32
    %3 = arith.remsi %arg0, %c2_i32 : i32
    %c1_i32 = arith.constant 1 : i32
    %4 = arith.addi %arg0, %c1_i32 : i32
    %c1_i32_1 = arith.constant 1 : i32
    %5 = arith.cmpi slt, %4, %c1_i32_1 : i32
    %6 = arith.extui %5 : i1 to i32
    %c0_i32_2 = arith.constant 0 : i32
    %7 = arith.cmpi ne, %6, %c0_i32_2 : i32
    scf.if %7 {
      %c1_i32_12 = arith.constant 1 : i32
      %24 = arith.addi %arg0, %c1_i32_12 : i32
      %c1_i32_13 = arith.constant 1 : i32
      %25 = arith.addi %arg0, %c1_i32_13 : i32
      %c2_i32_14 = arith.constant 2 : i32
      %26 = arith.remsi %25, %c2_i32_14 : i32
      %c128_i32_15 = arith.constant 128 : i32
      %27 = arith.muli %24, %c128_i32_15 : i32
      %c0_i32_16 = arith.constant 0 : i32
      %c128_i32_17 = arith.constant 128 : i32
      %28 = arith.addi %c0_i32_16, %c128_i32_17 : i32
      %c1_i32_18 = arith.constant 1 : i32
      scf.for %arg9 = %c0_i32_16 to %28 step %c1_i32_18  : i32 {
        %29 = arith.addi %27, %arg9 : i32
        %30 = arith.index_cast %29 : i32 to index
        %31 = memref.load %arg1[%30] : memref<128xi32, #tpu.memory_space<smem>>
        %32 = arith.addi %27, %arg9 : i32
        %33 = arith.index_cast %32 : i32 to index
        %34 = memref.load %arg2[%33] : memref<128xi32, #tpu.memory_space<smem>>
        %c0_i32_20 = arith.constant 0 : i32
        %c0_i32_21 = arith.constant 0 : i32
        %35 = tpu.memref_slice %arg3[%31, %c0_i32_21] : memref<16x128xf32, #tpu.memory_space<any>> -> memref<1x128xf32, #tpu.memory_space<any>>
        %36 = tpu.memref_squeeze %35 : memref<1x128xf32, #tpu.memory_space<any>> -> memref<128xf32, #tpu.memory_space<any>>
        %c0_i32_22 = arith.constant 0 : i32
        %37 = tpu.memref_slice %arg6[%26, %arg9, %c0_i32_22] : memref<2x128x128xf32, #tpu.memory_space<vmem>> -> memref<1x1x128xf32, #tpu.memory_space<vmem>>
        %38 = tpu.memref_squeeze %37 : memref<1x1x128xf32, #tpu.memory_space<vmem>> -> memref<128xf32, #tpu.memory_space<vmem>>
        %39 = tpu.memref_slice %arg8[%c0_i32_20, %26] : memref<2x2x!tpu.dma_semaphore, #tpu.memory_space<semaphore_mem>> -> memref<1x1x!tpu.dma_semaphore, #tpu.memory_space<semaphore_mem>>
        %40 = tpu.memref_squeeze %39 : memref<1x1x!tpu.dma_semaphore, #tpu.memory_space<semaphore_mem>> -> memref<!tpu.dma_semaphore, #tpu.memory_space<semaphore_mem>>
        tpu.enqueue_dma source(%36 : memref<128xf32, #tpu.memory_space<any>>) target(%38 : memref<128xf32, #tpu.memory_space<vmem>>) target_semaphore(%40 : memref<!tpu.dma_semaphore, #tpu.memory_space<semaphore_mem>>)
        %c1_i32_23 = arith.constant 1 : i32
        %c0_i32_24 = arith.constant 0 : i32
        %41 = tpu.memref_slice %arg4[%34, %c0_i32_24] : memref<32x128xf32, #tpu.memory_space<any>> -> memref<1x128xf32, #tpu.memory_space<any>>
        %42 = tpu.memref_squeeze %41 : memref<1x128xf32, #tpu.memory_space<any>> -> memref<128xf32, #tpu.memory_space<any>>
        %c0_i32_25 = arith.constant 0 : i32
        %43 = tpu.memref_slice %arg7[%26, %arg9, %c0_i32_25] : memref<2x128x128xf32, #tpu.memory_space<vmem>> -> memref<1x1x128xf32, #tpu.memory_space<vmem>>
        %44 = tpu.memref_squeeze %43 : memref<1x1x128xf32, #tpu.memory_space<vmem>> -> memref<128xf32, #tpu.memory_space<vmem>>
        %45 = tpu.memref_slice %arg8[%c1_i32_23, %26] : memref<2x2x!tpu.dma_semaphore, #tpu.memory_space<semaphore_mem>> -> memref<1x1x!tpu.dma_semaphore, #tpu.memory_space<semaphore_mem>>
        %46 = tpu.memref_squeeze %45 : memref<1x1x!tpu.dma_semaphore, #tpu.memory_space<semaphore_mem>> -> memref<!tpu.dma_semaphore, #tpu.memory_space<semaphore_mem>>
        tpu.enqueue_dma source(%42 : memref<128xf32, #tpu.memory_space<any>>) target(%44 : memref<128xf32, #tpu.memory_space<vmem>>) target_semaphore(%46 : memref<!tpu.dma_semaphore, #tpu.memory_space<semaphore_mem>>)
      }
      %c128_i32_19 = arith.constant 128 : i32
    } else {
    }
    %c0_i32_3 = arith.constant 0 : i32
    %c128_i32 = arith.constant 128 : i32
    %8 = arith.addi %c0_i32_3, %c128_i32 : i32
    %c1_i32_4 = arith.constant 1 : i32
    scf.for %arg9 = %c0_i32_3 to %8 step %c1_i32_4  : i32 {
      %c0_i32_12 = arith.constant 0 : i32
      %c0_i32_13 = arith.constant 0 : i32
      %c0_i32_14 = arith.constant 0 : i32
      %24 = tpu.memref_slice %arg3[%c0_i32_12, %c0_i32_14] : memref<16x128xf32, #tpu.memory_space<any>> -> memref<1x128xf32, #tpu.memory_space<any>>
      %25 = tpu.memref_squeeze %24 : memref<1x128xf32, #tpu.memory_space<any>> -> memref<128xf32, #tpu.memory_space<any>>
      %c0_i32_15 = arith.constant 0 : i32
      %26 = tpu.memref_slice %arg6[%3, %arg9, %c0_i32_15] : memref<2x128x128xf32, #tpu.memory_space<vmem>> -> memref<1x1x128xf32, #tpu.memory_space<vmem>>
      %27 = tpu.memref_squeeze %26 : memref<1x1x128xf32, #tpu.memory_space<vmem>> -> memref<128xf32, #tpu.memory_space<vmem>>
      %28 = tpu.memref_slice %arg8[%c0_i32_13, %3] : memref<2x2x!tpu.dma_semaphore, #tpu.memory_space<semaphore_mem>> -> memref<1x1x!tpu.dma_semaphore, #tpu.memory_space<semaphore_mem>>
      %29 = tpu.memref_squeeze %28 : memref<1x1x!tpu.dma_semaphore, #tpu.memory_space<semaphore_mem>> -> memref<!tpu.dma_semaphore, #tpu.memory_space<semaphore_mem>>
      tpu.wait_dma2 semaphore(%29 : memref<!tpu.dma_semaphore, #tpu.memory_space<semaphore_mem>>) src(%25 : memref<128xf32, #tpu.memory_space<any>>) dst(%27 : memref<128xf32, #tpu.memory_space<vmem>>)
      %c0_i32_16 = arith.constant 0 : i32
      %c1_i32_17 = arith.constant 1 : i32
      %c0_i32_18 = arith.constant 0 : i32
      %30 = tpu.memref_slice %arg4[%c0_i32_16, %c0_i32_18] : memref<32x128xf32, #tpu.memory_space<any>> -> memref<1x128xf32, #tpu.memory_space<any>>
      %31 = tpu.memref_squeeze %30 : memref<1x128xf32, #tpu.memory_space<any>> -> memref<128xf32, #tpu.memory_space<any>>
      %c0_i32_19 = arith.constant 0 : i32
      %32 = tpu.memref_slice %arg7[%3, %arg9, %c0_i32_19] : memref<2x128x128xf32, #tpu.memory_space<vmem>> -> memref<1x1x128xf32, #tpu.memory_space<vmem>>
      %33 = tpu.memref_squeeze %32 : memref<1x1x128xf32, #tpu.memory_space<vmem>> -> memref<128xf32, #tpu.memory_space<vmem>>
      %34 = tpu.memref_slice %arg8[%c1_i32_17, %3] : memref<2x2x!tpu.dma_semaphore, #tpu.memory_space<semaphore_mem>> -> memref<1x1x!tpu.dma_semaphore, #tpu.memory_space<semaphore_mem>>
      %35 = tpu.memref_squeeze %34 : memref<1x1x!tpu.dma_semaphore, #tpu.memory_space<semaphore_mem>> -> memref<!tpu.dma_semaphore, #tpu.memory_space<semaphore_mem>>
      tpu.wait_dma2 semaphore(%35 : memref<!tpu.dma_semaphore, #tpu.memory_space<semaphore_mem>>) src(%31 : memref<128xf32, #tpu.memory_space<any>>) dst(%33 : memref<128xf32, #tpu.memory_space<vmem>>)
    }
    %c128_i32_5 = arith.constant 128 : i32
    %9 = arith.index_cast %3 : i32 to index
    %c0 = arith.constant 0 : index
    %c0_6 = arith.constant 0 : index
    %10 = vector.load %arg6[%9, %c0, %c0_6] : memref<2x128x128xf32, #tpu.memory_space<vmem>>, vector<1x128x128xf32>
    %11 = vector.shape_cast %10 : vector<1x128x128xf32> to vector<128x128xf32>
    %12 = arith.index_cast %3 : i32 to index
    %c0_7 = arith.constant 0 : index
    %c0_8 = arith.constant 0 : index
    %13 = vector.load %arg7[%12, %c0_7, %c0_8] : memref<2x128x128xf32, #tpu.memory_space<vmem>>, vector<1x128x128xf32>
    %14 = vector.shape_cast %13 : vector<1x128x128xf32> to vector<128x128xf32>
    %15 = arith.mulf %11, %14 : vector<128x128xf32>
    %cst = arith.constant dense<0.000000e+00> : vector<128xf32>
    %16 = vector.multi_reduction <add>, %15, %cst [1] : vector<128x128xf32> to vector<128xf32>
    %17 = arith.negf %16 : vector<128xf32>
    %18 = math.exp %17 : vector<128xf32>
    %cst_9 = arith.constant 1.000000e+00 : f32
    %19 = vector.broadcast %cst_9 : f32 to vector<128xf32>
    %20 = arith.addf %19, %18 : vector<128xf32>
    %21 = arith.divf %19, %20 : vector<128xf32>
    %22 = vector.shape_cast %21 : vector<128xf32> to vector<1x128xf32>
    %c0_10 = arith.constant 0 : index
    %c0_11 = arith.constant 0 : index
    %23 = vector.load %arg5[%c0_10, %c0_11] : memref<1x128xf32, #tpu.memory_space<vmem>>, vector<1x128xf32>
    tpu.vector_store %arg5[%c0_10, %c0_11], %22 {strides = array<i32>} : memref<1x128xf32, #tpu.memory_space<vmem>>, vector<1x128xf32>,
    return
  }
  func.func @transform_2(%arg0: i32, %arg1: memref<128xi32, #tpu.memory_space<smem>>, %arg2: memref<128xi32, #tpu.memory_space<smem>>) -> (i32, i32) {
    %c0_i32 = arith.constant 0 : i32
    %c0_i32_0 = arith.constant 0 : i32
    return %c0_i32, %arg0 : i32, i32
  }
}

</mosaic_0001>

<bundles_post_ra>
// kernel: _baseline_cf_forward_impl.1
= control target key start
LH: loop header
LB: loop body
LE: loop exit
PB: predicated region body
PF: predicated region fallthrough
CT: control target
= control target key end

     0   :  { %s907_s21 = smov [#allocation6]   ;;  %s908_s22 = smov [#allocation7]   ;;  %s1437_s0 = inlined_call_operand.hbm [shape: s32[128], index: 0, kind: input, shape index: {}]   ;;  %s1438_s2 = inlined_call_operand.hbm [shape: f32[16,128], index: 2, kind: input, shape index: {}]   ;;  %s1439_s3 = inlined_call_operand.hbm [shape: f32[32,128], index: 3, kind: input, shape index: {}]   ;;  %s1440_s4 = inlined_call_operand.hbm [shape: f32[1,128], index: 4, kind: output, shape index: {}]   ;;  %s1441_s1 = inlined_call_operand.hbm [shape: s32[128], index: 1, kind: input, shape index: {}]  }
   0x1   :  { %s10_s17 = sshll.u32 %s1437_s0, 4  ;;  %s15_s20 = sshll.u32 %s1441_s1, 4  ;;  %s11_s17 = int_to_ptr.hbm [resolvable:$true] %s10_s17  ;;  %s16_s20 = int_to_ptr.hbm [resolvable:$true] %s15_s20 }
   0x2   :  { %13 = dma.hbm_to_smem %s11_s17, 16, %s907_s21, [#allocation5] }
   0x3   :  { %18 = dma.hbm_to_smem %s16_s20, 16, %s908_s22, [#allocation5] }
   0x4   :  { %891 = dma.done.wait [#allocation5], 32 }
   0x5   :  { %892 = vsyncadd [#allocation5], 4294967264 }
   0x6   :  { %21 = sfence }
   0x7   :  { %22 = vsyncpa [#allocation9], 0  ;;  %s943_s23 = smov 0  }
   0x8 LB: > { %s33_s0 = sld [smem:[#allocation6 + %s901_s23]]  ;;  %s36_s24 = scalar_lea.vmem [#allocation2], %s901_s23  ;;  %s901_s23 = sphi %s943_s23, %s32_s23  }
   0x9   : > { %s34_s1 = sld [smem:[#allocation7 + %s901_s23]]  ;;  %s951_s25 = sshll.u32 %s36_s24, 4  ;;  %s47_s25 = int_to_ptr.vmem [resolvable:$true] %s951_s25 }
   0xa   : > { %s51_s26 = scalar_lea.vmem [#allocation3], %s901_s23  ;;  %s815_s14 = scalar_lea.hbm %s1438_s2, 16 }
   0xb   : > { %s954_s27 = sshll.u32 %s51_s26, 4  ;;  %s63_s27 = int_to_ptr.vmem [resolvable:$true] %s954_s27 }
   0xe   : > { %s35_s30 = scalar_lea.hbm %s1438_s2, %s33_s0 }
   0xf   : > { %s44_s5 = sshll.u32 %s35_s30, 4  ;;  %s50_s8 = scalar_lea.hbm %s1439_s3, %s34_s1  ;;  %s45_s5 = int_to_ptr.hbm [resolvable:$true] %s44_s5 }
  0x10   : > { %s964_s9 = sshll.u32 %s50_s8, 4  ;;  %s811_s10 = sshra.s32 %s45_s5, 4  ;;  %s812_s10 = int_to_ptr.hbm [resolvable:$true] %s811_s10  ;;  %s61_s9 = int_to_ptr.hbm [resolvable:$true] %s964_s9 }
  0x11   : > { %s813_s11 = scalar_lea.hbm %s812_s10, 1  ;;  %p816_p1 = scmp.lt.s32.totalorder %s812_s10, %s1438_s2 }
  0x12   : > { %p814_p0 = scmp.ne.s32.totalorder %s812_s10, %s813_s11  ;;  %p817_p2 = scmp.lt.s32.totalorder %s815_s14, %s813_s11 }
  0x14   : > { %p818_p3 = por %p817_p2, %p816_p1 }
  0x16   : > { %p819_p4 = pnand %p818_p3, %p814_p0 }
  0x18   : > { %822 = shalt.err (!%p819_p4)  }
  0x19   : > { %s823_s17 = sshra.s32 %s47_s25, 4  ;;  %s909_s19 = smov [#allocation2]   ;;  %s824_s17 = int_to_ptr.vmem [resolvable:$true] %s823_s17 }
  0x1a   : > { %s825_s18 = scalar_lea.vmem %s824_s17, 1  ;;  %s827_s20 = scalar_lea.vmem %s909_s19, 256 }
  0x1b   : > { %p826_p5 = scmp.ne.s32.totalorder %s824_s17, %s825_s18  ;;  %p828_p6 = scmp.lt.s32.totalorder %s824_s17, [#allocation2] }
  0x1c   : > { %p829_p7 = scmp.lt.s32.totalorder %s827_s20, %s825_s18 }
  0x1e   : > { %p830_p8 = por %p829_p7, %p828_p6 }
  0x20   : > { %p831_p9 = pnand %p830_p8, %p826_p5 }
  0x22   : > { %834 = shalt.err (!%p831_p9)  }
  0x23   : > { %49 = dma.hbm_to_vmem [thread:$0]  %s45_s5, 16, %s47_s25, [#allocation4] }
  0x24   : > { %s835_s21 = sshra.s32 %s61_s9, 4  ;;  %s839_s24 = scalar_lea.hbm %s1439_s3, 32  ;;  %s836_s21 = int_to_ptr.hbm [resolvable:$true] %s835_s21 }
  0x25   : > { %s837_s22 = scalar_lea.hbm %s836_s21, 1  ;;  %p840_p11 = scmp.lt.s32.totalorder %s836_s21, %s1439_s3 }
  0x26   : > { %p838_p10 = scmp.ne.s32.totalorder %s836_s21, %s837_s22  ;;  %p841_p12 = scmp.lt.s32.totalorder %s839_s24, %s837_s22 }
  0x28   : > { %p842_p13 = por %p841_p12, %p840_p11 }
  0x2a   : > { %p843_p0 = pnand %p842_p13, %p838_p10 }
  0x2c   : > { %846 = shalt.err (!%p843_p0)  }
  0x2d   : > { %s847_s25 = sshra.s32 %s63_s27, 4  ;;  %s910_s30 = smov [#allocation3]   ;;  %s848_s25 = int_to_ptr.vmem [resolvable:$true] %s847_s25 }
  0x2e   : > { %s849_s29 = scalar_lea.vmem %s848_s25, 1  ;;  %s851_s5 = scalar_lea.vmem %s910_s30, 256 }
  0x2f   : > { %p850_p1 = scmp.ne.s32.totalorder %s848_s25, %s849_s29  ;;  %p852_p2 = scmp.lt.s32.totalorder %s848_s25, [#allocation3] }
  0x30   : > { %p853_p3 = scmp.lt.s32.totalorder %s851_s5, %s849_s29 }
  0x32   : > { %p854_p4 = por %p853_p3, %p852_p2 }
  0x34   : > { %p855_p5 = pnand %p854_p4, %p850_p1 }
  0x36   : > { %858 = shalt.err (!%p855_p5)  }
  0x37   : > { %65 = dma.hbm_to_vmem [thread:$0]  %s61_s9, 16, %s63_s27, [#allocation4 + $0x2] }
  0x38   : > { %s32_s23 = sadd.s32 1, %s901_s23  }
  0x39   : > { %p29_p6 = scmp.ge.s32.totalorder %s32_s23, 128  }
  0x3a   :  { %s903_s6 = smov (%p29_p6), 0  }
  0x3b   :  { %31 = sbr.rel (!%p29_p6) target bundleno = 8 (0x8), region = 82 }
  0x40 LB: > { %893 = dma.done.wait [#allocation4], 16  ;;  %s905_s6 = sphi %s903_s6, %s129_s6  }
  0x41   : > { %894 = vsyncadd [#allocation4], 4294967280 }
  0x42   : > { %895 = dma.done.wait [#allocation4 + $0x2], 16 }
  0x43   : > { %896 = vsyncadd [#allocation4 + $0x2], 4294967280  ;;  %s129_s6 = sadd.s32 1, %s905_s6  }
  0x44   : > { %p126_p7 = scmp.ge.s32.totalorder %s129_s6, 128  }
  0x45   :  { %v142_v0 = vld [vmem:[#allocation2 + $0x20] sm:$0xff] (%p126_p7)  ;;  %v140_v2 = vld [vmem:[#allocation2 + $0x10] sm:$0xff] (%p126_p7)  ;;  %v143_v9 = vld [vmem:[#allocation2 + $0x28] sm:$0xff] (%p126_p7)  ;;  %v539_v56 = vlaneseq (%p126_p7)  ;;  %s911_s2 = smov (%p126_p7), [#allocation8]   ;;  %s611_s7 = sshll.u32 (%p126_p7), %s1440_s4, 4  ;;  %s612_s7 = int_to_ptr.hbm [resolvable:$true] %s611_s7 }
  0x46   :  { %128 = sbr.rel (!%p126_p7) target bundleno = 64 (0x40), region = 104  ;;  %v159_v1 = vld [vmem:[#allocation3 + $0x20] sm:$0xff] (%p126_p7)  ;;  %v157_v4 = vld [vmem:[#allocation3 + $0x10] sm:$0xff] (%p126_p7)  ;;  %v160_v10 = vld [vmem:[#allocation3 + $0x28] sm:$0xff] (%p126_p7)  ;;  %s609_s3 = sshll.u32 (%p126_p7), %s911_s2, 4  ;;  %s610_s3 = int_to_ptr.vmem [resolvable:$true] %s609_s3 }
  0x47   :  { %v175_v3 = vmul.f32 (%p126_p7), %v159_v1, %v142_v0  ;;  %v138_v5 = vld [vmem:[#allocation2] sm:$0xff] (%p126_p7)  ;;  %v173_v7 = vmul.f32 (%p126_p7), %v157_v4, %v140_v2  ;;  %v141_v11 = vld [vmem:[#allocation2 + $0x18] sm:$0xff] (%p126_p7)  ;;  %v139_v13 = vld [vmem:[#allocation2 + $0x8] sm:$0xff] (%p126_p7)  ;;  %v176_v15 = vmul.f32 (%p126_p7), %v160_v10, %v143_v9  ;;  %v991_v2 = vand.u32 (%p126_p7), 127, %v539_v56 }
  0x48   :  { %v155_v6 = vld [vmem:[#allocation3] sm:$0xff] (%p126_p7)  ;;  %v158_v12 = vld [vmem:[#allocation3 + $0x18] sm:$0xff] (%p126_p7)  ;;  %v156_v14 = vld [vmem:[#allocation3 + $0x8] sm:$0xff] (%p126_p7) }
  0x49   :  { %v171_v8 = vmul.f32 (%p126_p7), %v155_v6, %v138_v5  ;;  %195 = vadd.xlane.f32.xlu2 (%p126_p7), %v175_v3  ;;  %191 = vadd.xlane.f32.xlu1 (%p126_p7), %v173_v7  ;;  %v174_v16 = vmul.f32 (%p126_p7), %v158_v12, %v141_v11  ;;  %v172_v17 = vmul.f32 (%p126_p7), %v156_v14, %v139_v13  ;;  %v146_v18 = vld [vmem:[#allocation2 + $0x40] sm:$0xff] (%p126_p7)  ;;  %v145_v20 = vld [vmem:[#allocation2 + $0x38] sm:$0xff] (%p126_p7)  ;;  %v144_v22 = vld [vmem:[#allocation2 + $0x30] sm:$0xff] (%p126_p7)  ;;  %v999_v7 = vadd.s32 (%p126_p7), 4294967264, %v991_v2 }
  0x4a   :  { %v163_v19 = vld [vmem:[#allocation3 + $0x40] sm:$0xff] (%p126_p7)  ;;  %v162_v21 = vld [vmem:[#allocation3 + $0x38] sm:$0xff] (%p126_p7)  ;;  %v161_v23 = vld [vmem:[#allocation3 + $0x30] sm:$0xff] (%p126_p7)  ;;  %v1005_v9 = vadd.s32 (%p126_p7), 4294967256, %v991_v2 }
  0x4b   :  { %187 = vadd.xlane.f32.xlu0 %v171_v8  ;;  %v179_v24 = vmul.f32 %v163_v19, %v146_v18  ;;  %v178_v25 = vmul.f32 %v162_v21, %v145_v20  ;;  %v177_v26 = vmul.f32 %v161_v23, %v144_v22  ;;  %v149_v27 = vld [vmem:[#allocation2 + $0x58] sm:$0xff]  ;;  %v148_v29 = vld [vmem:[#allocation2 + $0x50] sm:$0xff]  ;;  %v147_v31 = vld [vmem:[#allocation2 + $0x48] sm:$0xff]  ;;  %v1002_v8 = vadd.s32 4294967280, %v991_v2 }
  0x4c   :  { %v166_v28 = vld [vmem:[#allocation3 + $0x58] sm:$0xff]  ;;  %v165_v30 = vld [vmem:[#allocation3 + $0x50] sm:$0xff]  ;;  %v164_v32 = vld [vmem:[#allocation3 + $0x48] sm:$0xff]  ;;  %v1023_v19 = vadd.s32 4294967288, %v991_v2 }
  0x4d   :  { %v182_v33 = vmul.f32 %v166_v28, %v149_v27  ;;  %v181_v34 = vmul.f32 %v165_v30, %v148_v29  ;;  %v180_v35 = vmul.f32 %v164_v32, %v147_v31  ;;  %v152_v36 = vld [vmem:[#allocation2 + $0x70] sm:$0xff]  ;;  %v151_v38 = vld [vmem:[#allocation2 + $0x68] sm:$0xff]  ;;  %v150_v40 = vld [vmem:[#allocation2 + $0x60] sm:$0xff] }
  0x4e   :  { %v169_v37 = vld [vmem:[#allocation3 + $0x70] sm:$0xff]  ;;  %v168_v39 = vld [vmem:[#allocation3 + $0x68] sm:$0xff]  ;;  %v167_v41 = vld [vmem:[#allocation3 + $0x60] sm:$0xff] }
  0x4f   :  { %v185_v42 = vmul.f32 %v169_v37, %v152_v36  ;;  %v184_v43 = vmul.f32 %v168_v39, %v151_v38  ;;  %v183_v44 = vmul.f32 %v167_v41, %v150_v40  ;;  %v153_v45 = vld [vmem:[#allocation2 + $0x78] sm:$0xff] }
  0x50   :  { %v170_v46 = vld [vmem:[#allocation3 + $0x78] sm:$0xff] }
  0x51   :  { %197 = vadd.xlane.f32.xlu2 %v176_v15  ;;  %193 = vadd.xlane.f32.xlu1 %v174_v16  ;;  %v186_v47 = vmul.f32 %v170_v46, %v153_v45  ;;  %v1014_v15 = vadd.s32 4294967272, %v991_v2 }
  0x53   :  { %189 = vadd.xlane.f32.xlu0 %v172_v17 }
  0x59   :  { %203 = vadd.xlane.f32.xlu2 %v179_v24  ;;  %201 = vadd.xlane.f32.xlu1 %v178_v25 }
  0x5b   :  { %199 = vadd.xlane.f32.xlu0 %v177_v26 }
  0x61   :  { %209 = vadd.xlane.f32.xlu2 %v182_v33  ;;  %207 = vadd.xlane.f32.xlu1 %v181_v34  ;;  %v1040_v34 = vadd.s32 4294967232, %v991_v2 }
  0x63   :  { %205 = vadd.xlane.f32.xlu0 %v180_v35 }
  0x69   :  { %215 = vadd.xlane.f32.xlu2 %v185_v42  ;;  %213 = vadd.xlane.f32.xlu1 %v184_v43 }
  0x6b   :  { %211 = vadd.xlane.f32.xlu0 %v183_v44 }
  0x73   :  { %217 = vadd.xlane.f32.xlu0 %v186_v47  ;;  %v1062_v47 = vadd.s32 4294967240, %v991_v2 }
  0xbc   :  { %v196_v48 = vpop.xlane.xlu2 %195  ;;  %v192_v50 = vpop.xlane.xlu1 %191 }
  0xbd   :  { %v684_v49 = vmul.f32 -1.442695, %v196_v48  ;;  %v682_v52 = vmul.f32 -1.442695, %v192_v50 }
  0xbe   :  { %v188_v51 = vpop.xlane.xlu0 %187 }
  0xbf   :  { %v680_v53 = vmul.f32 -1.442695, %v188_v51  ;;  %723 = vpow2.f32 %v684_v49 }
  0xc0   :  { %725 = vpow2.f32 %v682_v52 }
  0xc1   :  { %727 = vpow2.f32 %v680_v53 }
  0xc4   :  { %v198_v54 = vpop.xlane.xlu2 %197  ;;  %v194_v58 = vpop.xlane.xlu1 %193 }
  0xc5   :  { %v724_v55 = vpop.eup %723  ;;  %v685_v57 = vmul.f32 -1.442695, %v198_v54  ;;  %v683_v62 = vmul.f32 -1.442695, %v194_v58 }
  0xc6   :  { %v190_v59 = vpop.xlane.xlu0 %189  ;;  %v726_v60 = vpop.eup %725  ;;  %v986_v61 = vadd.f32 1.0, %v724_v55 }
  0xc7   :  { %v728_v63 = vpop.eup %727  ;;  %v988_v0 = vadd.f32 1.0, %v726_v60  ;;  %729 = vpow2.f32 %v685_v57  ;;  %v681_v1 = vmul.f32 -1.442695, %v190_v59  ;;  %v1084_v57 = vadd.s32 4294967248, %v991_v2 }
  0xc8   :  { %731 = vrcp.f32 %v986_v61  ;;  %v994_v3 = vadd.f32 1.0, %v728_v63  ;;  %v354_v4 = vand.u32 2147483648, %v986_v61  ;;  %v352_v12 = vand.u32 2147483647, %v986_v61 }
  0xc9   :  { %733 = vrcp.f32 %v988_v0  ;;  %v324_v13 = vand.u32 2147483648, %v988_v0  ;;  %vm348_vm0 = vweird.f32 %v986_v61  ;;  %vm318_vm1 = vweird.f32 %v988_v0 }
  0xca   :  { %735 = vpow2.f32 %v683_v62  ;;  %v355_v22 = vor.u32 1.1754944e-38, %v354_v4  ;;  %v322_v24 = vand.u32 2147483647, %v988_v0  ;;  %vm1033_vm2 = vcmp.eq.f32.partialorder %v352_v12, 8.507059e+37 }
  0xcb   :  { %737 = vpow2.f32 %v681_v1  ;;  %v325_v32 = vor.u32 1.1754944e-38, %v324_v13  ;;  %v292_v37 = vand.u32 2147483647, %v994_v3  ;;  %v294_v38 = vand.u32 2147483648, %v994_v3 }
  0xcc   :  { %739 = vrcp.f32 %v994_v3  ;;  %v204_v5 = vpop.xlane.xlu2 %203  ;;  %v202_v16 = vpop.xlane.xlu1 %201  ;;  %vm1049_vm4 = vcmp.eq.f32.partialorder %v322_v24, 8.507059e+37  ;;  %vm288_vm5 = vweird.f32 %v994_v3 }
  0xcd   :  { %v730_v6 = vpop.eup %729  ;;  %v688_v10 = vmul.f32 -1.442695, %v204_v5  ;;  %v687_v28 = vmul.f32 -1.442695, %v202_v16  ;;  %v295_v51 = vor.u32 1.1754944e-38, %v294_v38  ;;  %vm1077_vm8 = vcmp.eq.f32.partialorder %v292_v37, 8.507059e+37 }
  0xce   :  { %v1007_v11 = vpop.eup %731  ;;  %v1011_v14 = vadd.f32 1.0, %v730_v6  ;;  %v200_v20 = vpop.xlane.xlu0 %199 }
  0xcf   :  { %v1016_v17 = vpop.eup %733  ;;  %v344_v18 = vmul.f32 %v1007_v11, %v986_v61  ;;  %vm349_vm3 = vweird.f32 %v1007_v11  ;;  %v686_v53 = vmul.f32 -1.442695, %v200_v20 }
  0xd0   :  { %v736_v21 = vpop.eup %735  ;;  %v314_v23 = vmul.f32 %v1016_v17, %v988_v0  ;;  %741 = vrcp.f32 %v1011_v14  ;;  %v367_v41 = vand.u32 2147483647, %v1011_v14  ;;  %v369_v44 = vand.u32 2147483648, %v1011_v14  ;;  %vm1068_vm7 = vmor %vm348_vm0, %vm349_vm3 }
  0xd1   :  { %v738_v25 = vpop.eup %737  ;;  %v345_v26 = vsub.f32 1.0, %v344_v18  ;;  %v1029_v27 = vadd.f32 1.0, %v736_v21  ;;  %743 = vpow2.f32 %v688_v10  ;;  %vm319_vm6 = vweird.f32 %v1016_v17 }
  0xd2   :  { %v1031_v29 = vpop.eup %739  ;;  %v315_v31 = vsub.f32 1.0, %v314_v23  ;;  %v1037_v33 = vadd.f32 1.0, %v738_v25  ;;  %vm363_vm9 = vweird.f32 %v1011_v14  ;;  %vm1088_vm10 = vmor %vm318_vm1, %vm319_vm6  ;;  %vm1093_vm12 = vcmp.eq.f32.partialorder %v367_v41, 8.507059e+37 }
  0xd3   :  { %v346_v35 = vmul.f32 %v1007_v11, %v345_v26  ;;  %v284_v36 = vmul.f32 %v1031_v29, %v994_v3  ;;  %745 = vrcp.f32 %v1029_v27  ;;  %v339_v56 = vand.u32 2147483648, %v1029_v27 }
  0xd4   :  { %v316_v39 = vmul.f32 %v1016_v17, %v315_v31  ;;  %747 = vpow2.f32 %v687_v28  ;;  %vm289_vm11 = vweird.f32 %v1031_v29  ;;  %v370_v61 = vor.u32 1.1754944e-38, %v369_v44  ;;  %v210_v13 = vpop.xlane.xlu2 %209 }
  0xd5   :  { %v347_v42 = vadd.f32 %v1007_v11, %v346_v35  ;;  %v285_v43 = vsub.f32 1.0, %v284_v36  ;;  %749 = vrcp.f32 %v1037_v33  ;;  %v337_v4 = vand.u32 2147483647, %v1029_v27  ;;  %vm1128_vm0 = vmor %vm288_vm5, %vm289_vm11  ;;  %v208_v35 = vpop.xlane.xlu1 %207 }
  0xd6   :  { %v742_v45 = vpop.eup %741  ;;  %v317_v46 = vadd.f32 %v1016_v17, %v316_v39  ;;  %v1097_v62 = vpop.xlane.xlu0 %205  ;;  %vm333_vm14 = vweird.f32 %v1029_v27  ;;  %vm303_vm15 = vweird.f32 %v1037_v33  ;;  %v307_v18 = vand.u32 2147483647, %v1037_v33 }
  0xd7   :  { %v744_v48 = vpop.eup %743  ;;  %v286_v50 = vmul.f32 %v1031_v29, %v285_v43  ;;  %v359_v52 = vmul.f32 %v742_v45, %v1011_v14  ;;  %v351_v54 = vsel %vm1068_vm7, %v1007_v11, %v347_v42  ;;  %vm364_vm13 = vweird.f32 %v742_v45 }
  0xd8   :  { %v321_v0 = vsel %vm1088_vm10, %v1016_v17, %v317_v46  ;;  %v1106_v5 = vadd.f32 1.0, %v744_v48  ;;  %v1110_v10 = vsel %vm1033_vm2, %v355_v22, %v351_v54  ;;  %v1115_v17 = vor.u32 1.1754944e-38, %v339_v56  ;;  %vm365_vm1 = vmor %vm363_vm9, %vm364_vm13 }
  0xd9   :  { %v360_v59 = vsub.f32 1.0, %v359_v52  ;;  %v1099_v63 = vpop.eup %745  ;;  %v287_v1 = vadd.f32 %v1031_v29, %v286_v50  ;;  %v1122_v20 = vsel %vm1049_vm4, %v325_v32, %v321_v0  ;;  %v555_v25 = vperm.slane %v1110_v10, %v999_v7 }
  0xda   :  { %v748_v6 = vpop.eup %747  ;;  %v329_v12 = vmul.f32 %v1099_v63, %v1029_v27  ;;  %751 = vrcp.f32 %v1106_v5  ;;  %v309_v3 = vand.u32 2147483648, %v1037_v33  ;;  %v547_v36 = vperm.slane %v1122_v20, %v1002_v8 }
  0xdb   :  { %v361_v11 = vmul.f32 %v742_v45, %v360_v59  ;;  %v750_v16 = vpop.eup %749  ;;  %v291_v26 = vsel %vm1128_vm0, %v1031_v29, %v287_v1  ;;  %v1142_v28 = vadd.f32 1.0, %v748_v6  ;;  %753 = vpow2.f32 %v686_v53 }
  0xdc   :  { %v330_v23 = vsub.f32 1.0, %v329_v12  ;;  %v299_v24 = vmul.f32 %v750_v16, %v1037_v33  ;;  %vm544_vm2 = vcmask 130112   ;;  %vm1147_vm3 = vcmp.eq.f32.partialorder %v307_v18, 8.507059e+37  ;;  %v216_v58 = vpop.xlane.xlu2 %215 }
  0xdd   :  { %v362_v22 = vadd.f32 %v742_v45, %v361_v11  ;;  %v414_v14 = vand.u32 2147483648, %v1106_v5  ;;  %755 = vrcp.f32 %v1142_v28  ;;  %v296_v37 = vsel %vm1077_vm8, %v295_v51, %v291_v26 }
  0xde   :  { %v331_v31 = vmul.f32 %v1099_v63, %v330_v23  ;;  %v300_v32 = vsub.f32 1.0, %v299_v24  ;;  %vm1159_vm4 = vcmp.eq.f32.partialorder %v337_v4, 8.507059e+37  ;;  %vm304_vm5 = vweird.f32 %v750_v16  ;;  %v212_v49 = vpop.xlane.xlu0 %211 }
  0xdf   :  { %v366_v30 = vsel %vm365_vm1, %v742_v45, %v362_v22  ;;  %vm334_vm6 = vweird.f32 %v1099_v63  ;;  %v310_v42 = vor.u32 1.1754944e-38, %v309_v3  ;;  %v412_v43 = vand.u32 2147483647, %v1106_v5  ;;  %vm305_vm9 = vmor %vm303_vm15, %vm304_vm5 }
  0xe0   :  { %v1157_v38 = vsel %vm1093_vm12, %v370_v61, %v366_v30  ;;  %v301_v40 = vmul.f32 %v750_v16, %v300_v32  ;;  %v1163_v41 = vpop.eup %751  ;;  %v691_v44 = vmul.f32 -1.442695, %v210_v13  ;;  %v332_v45 = vadd.f32 %v1099_v63, %v331_v31  ;;  %vm1183_vm11 = vmor %vm333_vm14, %vm334_vm6 }
  0xe1   :  { %vm548_vm7 = vcmask 195712   ;;  %v404_v48 = vmul.f32 %v1163_v41, %v1106_v5  ;;  %vm408_vm8 = vweird.f32 %v1106_v5  ;;  %v541_v50 = vperm.slane %v296_v37, %v991_v2  ;;  %v754_v53 = vpop.eup %753 }
  0xe2   :  { %v302_v46 = vadd.f32 %v750_v16, %v301_v40  ;;  %v559_v51 = vperm.slane %v1157_v38, %v1005_v9  ;;  %v415_v52 = vor.u32 1.1754944e-38, %v414_v14  ;;  %757 = vpow2.f32 %v691_v44 }
  0xe3   :  { %v405_v55 = vsub.f32 1.0, %v404_v48  ;;  %vm393_vm10 = vweird.f32 %v1142_v28  ;;  %v690_v56 = vmul.f32 -1.442695, %v208_v35  ;;  %v1177_v59 = vpop.eup %755  ;;  %vm1189_vm12 = vcmp.eq.f32.partialorder %v412_v43, 8.507059e+37 }
  0xe4   :  { %v306_v54 = vsel %vm305_vm9, %v750_v16, %v302_v46  ;;  %v397_v0 = vand.u32 2147483647, %v1142_v28  ;;  %v1194_v1 = vadd.f32 1.0, %v754_v53  ;;  %v689_v4 = vmul.f32 -1.442695, %v1097_v62 }
  0xe5   :  { %v311_v33 = vsel %vm1147_vm3, %v310_v42, %v306_v54  ;;  %v336_v27 = vsel %vm1183_vm11, %v1099_v63, %v332_v45  ;;  %vm552_vm13 = vcmask 261312   ;;  %v406_v11 = vmul.f32 %v1163_v41, %v405_v55 }
  0xe6   :  { %v543_v6 = vperm.slane %v311_v33, %v1023_v19  ;;  %v389_v12 = vmul.f32 %v1177_v59, %v1142_v28  ;;  %vm409_vm14 = vweird.f32 %v1163_v41  ;;  %v399_v13 = vand.u32 2147483648, %v1142_v28  ;;  %v214_v19 = vpop.xlane.xlu1 %213  ;;  %v218_v37 = vpop.xlane.xlu0 %217 }
  0xe7   :  { %759 = vrcp.f32 %v1194_v1  ;;  %v694_v16 = vmul.f32 -1.442695, %v216_v58  ;;  %v407_v62 = vadd.f32 %v1163_v41, %v406_v11  ;;  %v1209_v63 = vadd.s32 4294967224, %v991_v2  ;;  %vm1224_vm1 = vmor %vm408_vm8, %vm409_vm14 }
  0xe8   :  { %v390_v18 = vsub.f32 1.0, %v389_v12  ;;  %761 = vpow2.f32 %v690_v56  ;;  %v758_v21 = vpop.eup %757  ;;  %v341_v22 = vsel %vm1159_vm4, %v1115_v17, %v336_v27  ;;  %vm394_vm15 = vweird.f32 %v1177_v59 }
  0xe9   :  { %vm1215_vm0 = vcmp.eq.f32.partialorder %v397_v0, 8.507059e+37  ;;  %763 = vpow2.f32 %v689_v4  ;;  %v545_v24 = vsel %vm544_vm2, %v543_v6, %v541_v50  ;;  %v382_v17 = vand.u32 2147483647, %v1194_v1  ;;  %vm1252_vm3 = vmor %vm393_vm10, %vm394_vm15 }
  0xea   :  { %v391_v3 = vmul.f32 %v1177_v59, %v390_v18  ;;  %v1230_v30 = vadd.f32 1.0, %v758_v21  ;;  %v411_v31 = vsel %vm1224_vm1, %v1163_v41, %v407_v62  ;;  %765 = vpow2.f32 %v694_v16 }
  0xeb   :  { %v693_v32 = vmul.f32 -1.442695, %v214_v19  ;;  %v692_v35 = vmul.f32 -1.442695, %v212_v49  ;;  %v400_v5 = vor.u32 1.1754944e-38, %v399_v13  ;;  %v384_v14 = vand.u32 2147483648, %v1194_v1 }
  0xec   :  { %v392_v29 = vadd.f32 %v1177_v59, %v391_v3  ;;  %767 = vrcp.f32 %v1230_v30  ;;  %v551_v40 = vperm.slane %v341_v22, %v1014_v15  ;;  %v549_v42 = vsel %vm548_vm7, %v547_v36, %v545_v24 }
  0xed   :  { %v760_v39 = vpop.eup %759  ;;  %vm378_vm2 = vweird.f32 %v1194_v1  ;;  %769 = vpow2.f32 %v693_v32  ;;  %v1246_v43 = vsel %vm1189_vm12, %v415_v52, %v411_v31  ;;  %vm1257_vm4 = vcmp.eq.f32.partialorder %v382_v17, 8.507059e+37 }
  0xee   :  { %v762_v41 = vpop.eup %761  ;;  %v374_v8 = vmul.f32 %v760_v39, %v1194_v1  ;;  %771 = vpow2.f32 %v692_v35  ;;  %v396_v36 = vsel %vm1252_vm3, %v1177_v59, %v392_v29  ;;  %v459_v45 = vand.u32 2147483648, %v1230_v30 }
  0xef   :  { %v764_v20 = vpop.eup %763  ;;  %v1265_v46 = vadd.f32 1.0, %v762_v41  ;;  %v695_v28 = vmul.f32 -1.442695, %v218_v37  ;;  %v385_v49 = vor.u32 1.1754944e-38, %v384_v14  ;;  %v457_v50 = vand.u32 2147483647, %v1230_v30 }
  0xf0   :  { %v375_v48 = vsub.f32 1.0, %v374_v8  ;;  %v1268_v52 = vadd.f32 1.0, %v764_v20  ;;  %v766_v53 = vpop.eup %765  ;;  %v1271_v54 = vsel %vm552_vm13, %v551_v40, %v549_v42  ;;  %v571_v55 = vperm.slane %v1246_v43, %v1040_v34 }
  0xf1   :  { %vm453_vm5 = vweird.f32 %v1230_v30  ;;  %773 = vrcp.f32 %v1265_v46  ;;  %v1281_v58 = vsel %vm1215_vm0, %v400_v5, %v396_v36  ;;  %vm379_vm6 = vweird.f32 %v760_v39 }
  0xf2   :  { %v1277_v56 = vpop.eup %767  ;;  %v376_v59 = vmul.f32 %v760_v39, %v375_v48  ;;  %775 = vrcp.f32 %v1268_v52  ;;  %v460_v61 = vor.u32 1.1754944e-38, %v459_v45  ;;  %v442_v0 = vand.u32 2147483647, %v1265_v46  ;;  %vm380_vm8 = vmor %vm378_vm2, %vm379_vm6 }
  0xf3   :  { %v770_v60 = vpop.eup %769  ;;  %v449_v33 = vmul.f32 %v1277_v56, %v1230_v30  ;;  %777 = vpow2.f32 %v695_v28  ;;  %vm1287_vm7 = vcmp.eq.f32.partialorder %v457_v50, 8.507059e+37  ;;  %v444_v11 = vand.u32 2147483648, %v1265_v46 }
  0xf4   :  { %v772_v4 = vpop.eup %771  ;;  %v377_v27 = vadd.f32 %v760_v39, %v376_v59  ;;  %v429_v12 = vand.u32 2147483648, %v1268_v52  ;;  %v1293_v13 = vadd.f32 1.0, %v766_v53  ;;  %v567_v16 = vperm.slane %v1281_v58, %v1062_v47 }
  0xf5   :  { %v450_v62 = vsub.f32 1.0, %v449_v33  ;;  %v427_v18 = vand.u32 2147483647, %v1268_v52  ;;  %v1300_v19 = vadd.f32 1.0, %v770_v60  ;;  %vm438_vm9 = vweird.f32 %v1265_v46 }
  0xf6   :  { %v381_v21 = vsel %vm380_vm8, %v760_v39, %v377_v27  ;;  %779 = vrcp.f32 %v1293_v13  ;;  %v1304_v22 = vadd.f32 1.0, %v772_v4  ;;  %vm454_vm10 = vweird.f32 %v1277_v56 }
  0xf7   :  { %v774_v23 = vpop.eup %773  ;;  %v1308_v24 = vsel %vm1257_vm4, %v385_v49, %v381_v21  ;;  %v451_v1 = vmul.f32 %v1277_v56, %v450_v62  ;;  %vm423_vm11 = vweird.f32 %v1268_v52  ;;  %781 = vrcp.f32 %v1300_v19  ;;  %vm1333_vm1 = vmor %vm453_vm5, %vm454_vm10 }
  0xf8   :  { %v776_v26 = vpop.eup %775  ;;  %v434_v3 = vmul.f32 %v774_v23, %v1265_v46  ;;  %vm1315_vm12 = vcmp.eq.f32.partialorder %v442_v0, 8.507059e+37  ;;  %v445_v31 = vor.u32 1.1754944e-38, %v444_v11  ;;  %v430_v32 = vor.u32 1.1754944e-38, %v429_v12 }
  0xf9   :  { %v504_v35 = vand.u32 2147483648, %v1293_v13  ;;  %v778_v29 = vpop.eup %777  ;;  %v563_v5 = vperm.slane %v1308_v24, %v1084_v57  ;;  %v452_v14 = vadd.f32 %v1277_v56, %v451_v1  ;;  %vm439_vm13 = vweird.f32 %v774_v23 }
  0xfa   :  { %v419_v37 = vmul.f32 %v776_v26, %v1268_v52  ;;  %vm1324_vm14 = vcmp.eq.f32.partialorder %v427_v18, 8.507059e+37  ;;  %vm498_vm15 = vweird.f32 %v1293_v13  ;;  %vm556_vm0 = vcmask 326912   ;;  %vm440_vm5 = vmor %vm438_vm9, %vm439_vm13 }
  0xfb   :  { %v435_v42 = vsub.f32 1.0, %v434_v3  ;;  %vm424_vm2 = vweird.f32 %v776_v26  ;;  %vm483_vm3 = vweird.f32 %v1300_v19  ;;  %v489_v41 = vand.u32 2147483648, %v1300_v19 }
  0xfc   :  { %783 = vrcp.f32 %v1304_v22  ;;  %v456_v44 = vsel %vm1333_vm1, %v1277_v56, %v452_v14  ;;  %v420_v8 = vsub.f32 1.0, %v419_v37  ;;  %v487_v15 = vand.u32 2147483647, %v1300_v19  ;;  %v780_v20 = vpop.eup %779  ;;  %vm425_vm10 = vmor %vm423_vm11, %vm424_vm2 }
  0xfd   :  { %v474_v30 = vand.u32 2147483648, %v1304_v22  ;;  %v436_v36 = vmul.f32 %v774_v23, %v435_v42  ;;  %v490_v45 = vor.u32 1.1754944e-38, %v489_v41  ;;  %v472_v28 = vand.u32 2147483647, %v1304_v22  ;;  %v782_v49 = vpop.eup %781 }
  0xfe   :  { %v1346_v48 = vadd.f32 1.0, %v778_v29  ;;  %v421_v50 = vmul.f32 %v776_v26, %v420_v8  ;;  %v494_v53 = vmul.f32 %v780_v20, %v1293_v13  ;;  %v1351_v56 = vsel %vm1287_vm7, %v460_v61, %v456_v44 }
  0xff   :  { %v475_v59 = vor.u32 1.1754944e-38, %v474_v30  ;;  %v437_v60 = vadd.f32 %v774_v23, %v436_v36  ;;  %v479_v33 = vmul.f32 %v782_v49, %v1300_v19  ;;  %vm484_vm4 = vweird.f32 %v782_v49 }
 0x100   :  { %785 = vrcp.f32 %v1346_v48  ;;  %v422_v0 = vadd.f32 %v776_v26, %v421_v50  ;;  %v495_v4 = vsub.f32 1.0, %v494_v53  ;;  %vm468_vm6 = vweird.f32 %v1304_v22 }
 0x101   :  { %vm1359_vm8 = vcmp.eq.f32.partialorder %v487_v15, 8.507059e+37  ;;  %vm499_vm7 = vweird.f32 %v780_v20  ;;  %v441_v6 = vsel %vm440_vm5, %v774_v23, %v437_v60  ;;  %v480_v11 = vsub.f32 1.0, %v479_v33 }
 0x102   :  { %v784_v61 = vpop.eup %783  ;;  %v502_v12 = vand.u32 2147483647, %v1293_v13  ;;  %v505_v46 = vor.u32 1.1754944e-38, %v504_v35  ;;  %v446_v62 = vsel %vm1315_vm12, %v445_v31, %v441_v6  ;;  %v426_v18 = vsel %vm425_vm10, %v776_v26, %v422_v0  ;;  %vm500_vm1 = vmor %vm498_vm15, %vm499_vm7 }
 0x103   :  { %v496_v21 = vmul.f32 %v780_v20, %v495_v4  ;;  %v464_v1 = vmul.f32 %v784_v61, %v1304_v22  ;;  %vm1370_vm9 = vcmp.eq.f32.partialorder %v472_v28, 8.507059e+37  ;;  %v431_v23 = vsel %vm1324_vm14, %v430_v32, %v426_v18  ;;  %vm485_vm14 = vmor %vm483_vm3, %vm484_vm4 }
 0x104   :  { %v481_v52 = vmul.f32 %v782_v49, %v480_v11  ;;  %vm469_vm11 = vweird.f32 %v784_v61  ;;  %vm1376_vm13 = vcmp.eq.f32.partialorder %v502_v12, 8.507059e+37  ;;  %v575_v17 = vperm.slane %v431_v23, %v1209_v63 }
 0x105   :  { %v465_v31 = vsub.f32 1.0, %v464_v1  ;;  %v497_v26 = vadd.f32 %v780_v20, %v496_v21  ;;  %vm513_vm12 = vweird.f32 %v1346_v48  ;;  %v517_v32 = vand.u32 2147483647, %v1346_v48  ;;  %vm470_vm3 = vmor %vm468_vm6, %vm469_vm11 }
 0x106   :  { %v786_v35 = vpop.eup %785  ;;  %v482_v14 = vadd.f32 %v782_v49, %v481_v52  ;;  %v519_v37 = vand.u32 2147483648, %v1346_v48  ;;  %v557_v63 = vsel %vm556_vm0, %v555_v25, %v1271_v54  ;;  %vm560_vm0 = vcmask 392512  }
 0x107   :  { %v466_v39 = vmul.f32 %v784_v61, %v465_v31  ;;  %v509_v40 = vmul.f32 %v786_v35, %v1346_v48  ;;  %v501_v42 = vsel %vm500_vm1, %v780_v20, %v497_v26  ;;  %vm514_vm2 = vweird.f32 %v786_v35 }
 0x108   :  { %v486_v13 = vsel %vm485_vm14, %v782_v49, %v482_v14  ;;  %v506_v41 = vsel %vm1376_vm13, %v505_v46, %v501_v42  ;;  %vm1398_vm15 = vcmp.eq.f32.partialorder %v517_v32, 8.507059e+37  ;;  %v520_v7 = vor.u32 1.1754944e-38, %v519_v37  ;;  %vm515_vm11 = vmor %vm513_vm12, %vm514_vm2 }
 0x109   :  { %v467_v10 = vadd.f32 %v784_v61, %v466_v39  ;;  %v510_v25 = vsub.f32 1.0, %v509_v40  ;;  %v491_v54 = vsel %vm1359_vm8, %v490_v45, %v486_v13  ;;  %v561_v19 = vsel %vm560_vm0, %v559_v51, %v557_v63 }
 0x10a   :  { %vm564_vm4 = vcmask 458112   ;;  %vm568_vm5 = vcmask 523712   ;;  %vm572_vm7 = vcmask 589312   ;;  %vm576_vm10 = vcmask 654912  }
 0x10b   :  { %v471_v8 = vsel %vm470_vm3, %v784_v61, %v467_v10  ;;  %v511_v15 = vmul.f32 %v786_v35, %v510_v25  ;;  %v565_v30 = vsel %vm564_vm4, %v563_v5, %v561_v19  ;;  %v578_v9 = vadd.s32 4294967216, %v991_v2 }
 0x10c   :  { %v476_v20 = vsel %vm1370_vm9, %v475_v59, %v471_v8  ;;  %v569_v22 = vsel %vm568_vm5, %v567_v16, %v565_v30  ;;  %vm580_vm6 = vcmask 720512   ;;  %v582_v36 = vadd.s32 4294967208, %v991_v2 }
 0x10d   :  { %v512_v38 = vadd.f32 %v786_v35, %v511_v15  ;;  %v573_v51 = vsel %vm572_vm7, %v571_v55, %v569_v22  ;;  %vm584_vm8 = vcmask 786112   ;;  %v579_v24 = vperm.slane %v446_v62, %v578_v9 }
 0x10e   :  { %v577_v57 = vsel %vm576_vm10, %v575_v17, %v573_v51  ;;  %v586_v47 = vadd.s32 4294967200, %v991_v2  ;;  %vm588_vm9 = vcmask 851712   ;;  %v583_v16 = vperm.slane %v1351_v56, %v582_v36 }
 0x10f   :  { %v516_v58 = vsel %vm515_vm11, %v786_v35, %v512_v38  ;;  %v590_v5 = vadd.s32 4294967192, %v991_v2  ;;  %vm592_vm13 = vcmask 917312   ;;  %v581_v43 = vsel %vm580_vm6, %v579_v24, %v577_v57 }
 0x110   :  { %v521_v34 = vsel %vm1398_vm15, %v520_v7, %v516_v58  ;;  %v587_v55 = vperm.slane %v476_v20, %v586_v47  ;;  %v594_v45 = vadd.s32 4294967184, %v991_v2  ;;  %v585_v28 = vsel %vm584_vm8, %v583_v16, %v581_v43 }
 0x111   :  { %v591_v48 = vperm.slane %v491_v54, %v590_v5  ;;  %vm596_vm12 = vcmask 982912   ;;  %v598_v49 = vadd.s32 4294967176, %v991_v2  ;;  %vm600_vm1 = vcmask 1048512  }
 0x112   :  { %v589_v50 = vsel %vm588_vm9, %v587_v55, %v585_v28  ;;  %v595_v53 = vperm.slane %v506_v41, %v594_v45 }
 0x113   :  { %v593_v59 = vsel %vm592_vm13, %v591_v48, %v589_v50  ;;  %v599_v56 = vperm.slane %v521_v34, %v598_v49 }
 0x114   :  { %v597_v60 = vsel %vm596_vm12, %v595_v53, %v593_v59 }
 0x115   :  { %v601_v33 = vsel %vm600_vm1, %v599_v56, %v597_v60 }
 0x116   :  { %603 = vst [vmem:[#allocation8] sm:$0x1] %v601_v33 }
 0x117   :  { %614 = dma.vmem_to_hbm [thread:$0]  %s610_s3, 16, %s612_s7, [#allocation9]  }
 0x118   :  { %897 = dma.done.wait [#allocation9], 16  }
 0x119   :  { %898 = vsyncadd [#allocation9], 4294967280 }
 0x11a   :  { %619 = vsyncpa [#allocation9], 1 }
 0x11b   :  { %620 = vsyncmov [#allocation4] }
 0x11e   :  { %s621_s8 = vpop.sfrf %620 }
 0x11f   :  { %p696_p8 = scmp.ne.s32.totalorder %s621_s8, 0 }
 0x121   :  { %625 = shalt.err (%p696_p8)  }
 0x122   :  { %627 = vsyncmov [#allocation4 + $0x1] }
 0x125   :  { %s628_s4 = vpop.sfrf %627 }
 0x126   :  { %p697_p9 = scmp.ne.s32.totalorder %s628_s4, 0 }
 0x128   :  { %632 = shalt.err (%p697_p9)  }
 0x129   :  { %634 = vsyncmov [#allocation4 + $0x2] }
 0x12c   :  { %s635_s9 = vpop.sfrf %634 }
 0x12d   :  { %p698_p10 = scmp.ne.s32.totalorder %s635_s9, 0 }
 0x12f   :  { %639 = shalt.err (%p698_p10)  }
 0x130   :  { %641 = vsyncmov [#allocation4 + $0x3] }
 0x133   :  { %s642_s10 = vpop.sfrf %641 }
 0x134   :  { %p699_p11 = scmp.ne.s32.totalorder %s642_s10, 0 }
 0x136   :  { %646 = shalt.err (%p699_p11)  }

</bundles_post_ra>
